<compile_context>
chip_gen: v5e
topology: v5e:2x2
jax: 0.10.0
libtpu: 0.0.40
codegen_flags: <defaults>
</compile_context>

<pallas_src>
import functools

import jax
import jax.numpy as jnp
from jax import lax
from jax.experimental import pallas as pl
from jax.experimental.pallas import tpu as pltpu

IN_CHANNELS = 4   # D of the points
BENCHMARK = False

# bf16 operands feed the MXU natively on v5e/v6e/v7x (f32 operands are
# multi-pass emulation). Accumulation stays f32.
MATMUL_DTYPE = jnp.bfloat16


def _round_up(x, m):
    return -(-x // m) * m


def _tpu_defaults():
    """Chip-aware tiling / dtype / VMEM defaults (conservative on unknowns)."""
    kind = ""
    try:
        kind = jax.devices()[0].device_kind.lower()
    except Exception:
        pass
    gen = 0
    for g in range(9, 3, -1):
        if (f"v{g}" in kind) or (f"tpu{g}" in kind):
            gen = g
            break
    multi_tc = ("v7" in kind) or ("tpu7" in kind) or ("v4" in kind) or ("v5p" in kind)
    if gen >= 7:
        # v7x: 64 MiB VMEM/TC -> keep the scoped limit <= ~48 MiB; 2 TCs.
        return dict(rows_per_step=2048, compute_dtype=jnp.bfloat16,
                    vmem_limit=48 * 1024 * 1024, multi_tc=True)
    if gen == 6:
        # v6e: bf16 VALU available, 128 MiB VMEM; big row blocks amortize the
        # ~0.35us/step overhead.
        return dict(rows_per_step=2048, compute_dtype=jnp.bfloat16,
                    vmem_limit=64 * 1024 * 1024, multi_tc=multi_tc)
    # v5e / older / unknown: slower MXU already hides step overhead at R~512,
    # no bf16 VALU -> keep the elementwise path in f32.
    return dict(rows_per_step=512, compute_dtype=jnp.float32,
                vmem_limit=64 * 1024 * 1024, multi_tc=multi_tc)


def _embed_kernel(src_ref, tgt_ref, w1_ref, b1_ref, w2_ref, b2_ref,
                  w3_ref, b3_ref, o_src_ref, o_tgt_ref,
                  acc_src_ref, acc_tgt_ref, *,
                  rows_in_last_tile, matmul_dtype, compute_dtype):
    """One grid step: Bt*Nt point-rows (per stream) through the 3-layer
    pointwise MLP, then an online max over the point axis per stream."""
    n_idx = pl.program_id(1)
    last_n = pl.num_programs(1) - 1

    @pl.when(n_idx == 0)
    def _init():
        acc_src_ref[...] = jnp.full_like(acc_src_ref, -jnp.inf)
        acc_tgt_ref[...] = jnp.full_like(acc_tgt_ref, -jnp.inf)

    bt, nt, d = src_ref.shape

    def mlp(x_ref):
        # (Bt*Nt, D) rows feed the MXU; cast to matmul dtype in VMEM (no host
        # astype pass over x). conv1/conv2/conv3 (k=1) == pointwise matmuls
        # with f32 accumulation; bias+relu run in compute_dtype.
        x = x_ref[...].reshape(bt * nt, d).astype(matmul_dtype)
        h = jnp.dot(x, w1_ref[...], preferred_element_type=jnp.float32)
        h = jnp.maximum(h.astype(compute_dtype) + b1_ref[...], 0).astype(matmul_dtype)
        h = jnp.dot(h, w2_ref[...], preferred_element_type=jnp.float32)
        h = jnp.maximum(h.astype(compute_dtype) + b2_ref[...], 0).astype(matmul_dtype)
        h = jnp.dot(h, w3_ref[...], preferred_element_type=jnp.float32) + b3_ref[...]
        return h.reshape(bt, nt, h.shape[-1])          # (Bt, Nt, 256) f32

    # Two independent chains: dot-k of one stream overlaps bias/relu of the
    # other (MXU / VPU co-issue), and doubles useful work per grid step.
    h_src = mlp(src_ref)
    h_tgt = mlp(tgt_ref)

    def fold(hs, ht):
        acc_src_ref[...] = jnp.maximum(acc_src_ref[...], jnp.max(hs, axis=1))
        acc_tgt_ref[...] = jnp.maximum(acc_tgt_ref[...], jnp.max(ht, axis=1))

    if rows_in_last_tile == nt:
        # N divides the tile: no masking anywhere (fast path, statically chosen).
        fold(h_src, h_tgt)
    else:
        # Only the (single) ragged last tile needs masking; mask is a tiny
        # static (1, Nt, 1) predicate that broadcasts inside jnp.where.
        neg_inf = jnp.float32(-jnp.inf)
        valid = lax.broadcasted_iota(jnp.int32, (1, nt, 1), 1) < rows_in_last_tile

        @pl.when(n_idx != last_n)
        def _full_tile():
            fold(h_src, h_tgt)

        @pl.when(n_idx == last_n)
        def _ragged_tile():
            fold(jnp.where(valid, h_src, neg_inf),
                 jnp.where(valid, h_tgt, neg_inf))

    @pl.when(n_idx == last_n)
    def _finalize():
        o_src_ref[0] = acc_src_ref[...].astype(o_src_ref.dtype)
        o_tgt_ref[0] = acc_tgt_ref[...].astype(o_tgt_ref.dtype)


def dual_embed_pallas(src, tgt, params, *, rows_per_step=None, matmul_dtype=None,
                      compute_dtype=None, vmem_limit_bytes=None, multi_tc=None):
    """src, tgt: (B, N, D) -> (emb_src, emb_tgt), each (B, 256) float32."""
    assert src.shape == tgt.shape, (src.shape, tgt.shape)
    B, N, D = src.shape
    w1, b1, w2, b2, w3, b3 = params
    C1, C2, C = w1.shape[1], w2.shape[1], w3.shape[1]

    cfg = _tpu_defaults()
    rows_per_step = rows_per_step or cfg["rows_per_step"]
    matmul_dtype = matmul_dtype or MATMUL_DTYPE
    compute_dtype = compute_dtype or cfg["compute_dtype"]
    vmem_limit_bytes = vmem_limit_bytes or cfg["vmem_limit"]
    if multi_tc is None:
        multi_tc = cfg["multi_tc"]

    # --- Tile selection (no input padding; ragged tiles masked in-kernel). ---
    nt = max(8, min(_round_up(rows_per_step, 8), _round_up(N, 8)))   # mult of 8
    n_n_blocks = pl.cdiv(N, nt)
    rows_in_last_tile = N - (n_n_blocks - 1) * nt

    bt = max(1, min(B, rows_per_step // nt))
    if multi_tc and B >= 2:
        # Keep >= 2 batch blocks so the "parallel" axis spans both TensorCores.
        bt = min(bt, pl.cdiv(B, 2))
    n_b_blocks = pl.cdiv(B, bt)

    # Tiny per-call casts (weights ~41K params); x itself is cast in-kernel.
    w1c, w2c, w3c = (w.astype(matmul_dtype) for w in (w1, w2, w3))
    b1c = b1.astype(compute_dtype)
    b2c = b2.astype(compute_dtype)
    b3c = b3.astype(jnp.float32)

    kernel = functools.partial(
        _embed_kernel, rows_in_last_tile=rows_in_last_tile,
        matmul_dtype=matmul_dtype, compute_dtype=compute_dtype)

    flops = 2 * 2 * B * N * (D * C1 + C1 * C2 + C2 * C)   # 2 streams
    bytes_accessed = (src.size * src.dtype.itemsize + tgt.size * tgt.dtype.itemsize
                      + sum(a.size * a.dtype.itemsize
                            for a in (w1c, b1c, w2c, b2c, w3c, b3c))
                      + 2 * n_b_blocks * bt * C * 4)

    out_src, out_tgt = pl.pallas_call(
        kernel,
        out_shape=(jax.ShapeDtypeStruct((n_b_blocks, bt, C), jnp.float32),
                   jax.ShapeDtypeStruct((n_b_blocks, bt, C), jnp.float32)),
        grid_spec=pltpu.PrefetchScalarGridSpec(
            num_scalar_prefetch=0,
            grid=(n_b_blocks, n_n_blocks),
            in_specs=[
                pl.BlockSpec((bt, nt, D), lambda b, n: (b, n, 0)),    # src tile
                pl.BlockSpec((bt, nt, D), lambda b, n: (b, n, 0)),    # tgt tile
                pl.BlockSpec((D, C1), lambda b, n: (0, 0)),           # W1
                pl.BlockSpec((1, C1), lambda b, n: (0, 0)),           # b1
                pl.BlockSpec((C1, C2), lambda b, n: (0, 0)),          # W2
                pl.BlockSpec((1, C2), lambda b, n: (0, 0)),           # b2
                pl.BlockSpec((C2, C), lambda b, n: (0, 0)),           # W3
                pl.BlockSpec((1, C), lambda b, n: (0, 0)),            # b3
            ],
            out_specs=[pl.BlockSpec((1, bt, C), lambda b, n: (b, 0, 0)),
                       pl.BlockSpec((1, bt, C), lambda b, n: (b, 0, 0))],
            scratch_shapes=[pltpu.VMEM((bt, C), jnp.float32),
                            pltpu.VMEM((bt, C), jnp.float32)],
        ),
        compiler_params=pltpu.CompilerParams(
            dimension_semantics=("parallel", "arbitrary"),
            vmem_limit_bytes=vmem_limit_bytes),
        cost_estimate=pl.CostEstimate(flops=flops, transcendentals=0,
                                      bytes_accessed=int(bytes_accessed)),
    )(src, tgt, w1c, b1c, w2c, b2c, w3c, b3c)

    emb_src = out_src.reshape(n_b_blocks * bt, C)[:B]   # drop partial batch block
    emb_tgt = out_tgt.reshape(n_b_blocks * bt, C)[:B]
    return emb_src, emb_tgt


def state_embed_h_forward(src, tgt, params, **kwargs):
    """src, tgt: (B, N, D). Returns state (B, 512, 1), matching the PyTorch module."""
    if BENCHMARK and tgt.ndim != 3:
        # tgt already embedded; run src through both streams and keep one.
        emb_src, _ = dual_embed_pallas(src, src, params, **kwargs)
        return jnp.concatenate((emb_src[:, :, None], tgt), axis=1)
    emb_src, emb_tgt = dual_embed_pallas(src, tgt, params, **kwargs)
    return jnp.concatenate((emb_src, emb_tgt), axis=1)[:, :, None]   # (B, 512, 1)


def init_params(key):
    """Deterministic synthetic init matching Conv1d(k=1) weight shapes.
    Weights stored transposed (in_ch, out_ch) for channel-last matmul."""
    ks = jax.random.split(key, 6)

    def u(k, shape, fan_in):
        bound = 1.0 / jnp.sqrt(fan_in)
        return jax.random.uniform(k, shape, jnp.float32, -bound, bound)

    w1 = u(ks[0], (IN_CHANNELS, 64), IN_CHANNELS)
    b1 = u(ks[1], (1, 64), IN_CHANNELS)
    w2 = u(ks[2], (64, 128), 64)
    b2 = u(ks[3], (1, 128), 64)
    w3 = u(ks[4], (128, 256), 128)
    b3 = u(ks[5], (1, 256), 128)
    return (w1, b1, w2, b2, w3, b3)


def _reference_forward(src, tgt, params):
    """Pure-JAX reference of the PyTorch forward (for correctness check)."""
    w1, b1, w2, b2, w3, b3 = params

    def embed(x):  # x: (B, N, D)
        h1 = jax.nn.relu(jnp.einsum("bnd,dc->bnc", x, w1) + b1)
        h2 = jax.nn.relu(jnp.einsum("bnc,ck->bnk", h1, w2) + b2)
        h3 = jnp.einsum("bnk,km->bnm", h2, w3) + b3
        return jnp.max(h3, axis=1)[:, :, None]        # (B, 256, 1)

    return jnp.concatenate((embed(src), embed(tgt)), axis=1)


if __name__ == "__main__":
    key = jax.random.PRNGKey(0)
    k_src, k_tgt, k_par = jax.random.split(key, 3)

    B, N, D = 2, 16, IN_CHANNELS
    src = jax.random.normal(k_src, (B, N, D), jnp.float32)
    tgt = jax.random.normal(k_tgt, (B, N, D), jnp.float32)
    params = init_params(k_par)

    ref = _reference_forward(src, tgt, params)

    # 1) Exact-precision path (f32 matmul operands) -> tight check vs reference.
    fwd_f32 = jax.jit(functools.partial(state_embed_h_forward,
                                        matmul_dtype=jnp.float32,
                                        compute_dtype=jnp.float32))
    state_f32 = jax.block_until_ready(fwd_f32(src, tgt, params))
    assert state_f32.shape == (B, 512, 1), state_f32.shape
    assert jnp.allclose(state_f32, ref, atol=1e-5, rtol=1e-5), "f32 path mismatch"

    # 2) Production path (bf16 MXU operands, chip-tuned tiles) -> loose check.
    fwd = jax.jit(state_embed_h_forward)
    state = jax.block_until_ready(fwd(src, tgt, params))
    assert state.shape == (B, 512, 1), state.shape
    assert jnp.allclose(state, ref, atol=5e-2, rtol=5e-2), "bf16 path mismatch"

    print("KERNEL_OK")
</pallas_src>

<mosaic_0001>
module attributes {stable_mosaic.version = 11 : i64} {
  func.func @_embed_kernel(%arg0: i32, %arg1: i32, %arg2: memref<2x16x4xf32, #tpu.memory_space<vmem>>, %arg3: memref<2x16x4xf32, #tpu.memory_space<vmem>>, %arg4: memref<4x64xf32, #tpu.memory_space<vmem>>, %arg5: memref<1x64xf32, #tpu.memory_space<vmem>>, %arg6: memref<64x128xf32, #tpu.memory_space<vmem>>, %arg7: memref<1x128xf32, #tpu.memory_space<vmem>>, %arg8: memref<128x256xf32, #tpu.memory_space<vmem>>, %arg9: memref<1x256xf32, #tpu.memory_space<vmem>>, %arg10: memref<1x2x256xf32, #tpu.memory_space<vmem>>, %arg11: memref<1x2x256xf32, #tpu.memory_space<vmem>>, %arg12: memref<2x256xf32, #tpu.memory_space<vmem>>, %arg13: memref<2x256xf32, #tpu.memory_space<vmem>>) attributes {dimension_semantics = [#tpu.dimension_semantics<parallel>, #tpu.dimension_semantics<arbitrary>], iteration_bounds = array<i64: 1, 1>, scalar_prefetch = 0 : i64, scratch_operands = 2 : i64, tpu.core_type = #tpu.core_type<tc>, window_params = [{transform_indices = @transform_0, window_bounds = array<i64: 2, 16, 4>}, {transform_indices = @transform_1, window_bounds = array<i64: 2, 16, 4>}, {pipeline_mode = #tpu.pipeline_mode<synchronous>, transform_indices = @transform_2, window_bounds = array<i64: 4, 64>}, {pipeline_mode = #tpu.pipeline_mode<synchronous>, transform_indices = @transform_3, window_bounds = array<i64: 1, 64>}, {pipeline_mode = #tpu.pipeline_mode<synchronous>, transform_indices = @transform_4, window_bounds = array<i64: 64, 128>}, {pipeline_mode = #tpu.pipeline_mode<synchronous>, transform_indices = @transform_5, window_bounds = array<i64: 1, 128>}, {pipeline_mode = #tpu.pipeline_mode<synchronous>, transform_indices = @transform_6, window_bounds = array<i64: 128, 256>}, {pipeline_mode = #tpu.pipeline_mode<synchronous>, transform_indices = @transform_7, window_bounds = array<i64: 1, 256>}, {transform_indices = @transform_8, window_bounds = array<i64: 1, 2, 256>}, {transform_indices = @transform_9, window_bounds = array<i64: 1, 2, 256>}]} {
    %c0_i32 = arith.constant 0 : i32
    %0 = arith.cmpi eq, %arg1, %c0_i32 : i32
    %1 = arith.extui %0 : i1 to i32
    %c0_i32_0 = arith.constant 0 : i32
    %2 = arith.cmpi ne, %1, %c0_i32_0 : i32
    scf.if %2 {
      %cst_51 = arith.constant 0xFF800000 : f32
      %58 = vector.broadcast %cst_51 : f32 to vector<2x256xf32>
      %c0_52 = arith.constant 0 : index
      %c0_53 = arith.constant 0 : index
      %59 = vector.load %arg12[%c0_52, %c0_53] : memref<2x256xf32, #tpu.memory_space<vmem>>, vector<2x256xf32>
      tpu.vector_store %arg12[%c0_52, %c0_53], %58 {strides = array<i32>} : memref<2x256xf32, #tpu.memory_space<vmem>>, vector<2x256xf32>,
      %cst_54 = arith.constant 0xFF800000 : f32
      %60 = vector.broadcast %cst_54 : f32 to vector<2x256xf32>
      %c0_55 = arith.constant 0 : index
      %c0_56 = arith.constant 0 : index
      %61 = vector.load %arg13[%c0_55, %c0_56] : memref<2x256xf32, #tpu.memory_space<vmem>>, vector<2x256xf32>
      tpu.vector_store %arg13[%c0_55, %c0_56], %60 {strides = array<i32>} : memref<2x256xf32, #tpu.memory_space<vmem>>, vector<2x256xf32>,
    } else {
    }
    %c0 = arith.constant 0 : index
    %c0_1 = arith.constant 0 : index
    %c0_2 = arith.constant 0 : index
    %3 = vector.load %arg2[%c0, %c0_1, %c0_2] : memref<2x16x4xf32, #tpu.memory_space<vmem>>, vector<2x16x4xf32>
    %4 = vector.shape_cast %3 : vector<2x16x4xf32> to vector<32x4xf32>
    %c0_3 = arith.constant 0 : index
    %c0_4 = arith.constant 0 : index
    %5 = vector.load %arg4[%c0_3, %c0_4] : memref<4x64xf32, #tpu.memory_space<vmem>>, vector<4x64xf32>
    %cst = arith.constant dense<0.000000e+00> : vector<32x64xf32>
    %6 = tpu.matmul %4, %5, %cst {dimension_numbers = #tpu.dot_dimension_numbers<[1], [0], [0], [1], [0, 0, 1, 1], [], []>} : vector<32x4xf32>, vector<4x64xf32>, vector<32x64xf32> -> vector<32x64xf32>
    %c0_5 = arith.constant 0 : index
    %c0_6 = arith.constant 0 : index
    %7 = vector.load %arg5[%c0_5, %c0_6] : memref<1x64xf32, #tpu.memory_space<vmem>>, vector<1x64xf32>
    %8 = vector.broadcast %7 : vector<1x64xf32> to vector<32x64xf32>
    %9 = arith.addf %6, %8 : vector<32x64xf32>
    %cst_7 = arith.constant 0.000000e+00 : f32
    %10 = vector.broadcast %cst_7 : f32 to vector<32x64xf32>
    %11 = arith.maximumf %9, %10 : vector<32x64xf32>
    %c0_8 = arith.constant 0 : index
    %c0_9 = arith.constant 0 : index
    %12 = vector.load %arg6[%c0_8, %c0_9] : memref<64x128xf32, #tpu.memory_space<vmem>>, vector<64x128xf32>
    %cst_10 = arith.constant dense<0.000000e+00> : vector<32x128xf32>
    %13 = tpu.matmul %11, %12, %cst_10 {dimension_numbers = #tpu.dot_dimension_numbers<[1], [0], [0], [1], [0, 0, 1, 1], [], []>} : vector<32x64xf32>, vector<64x128xf32>, vector<32x128xf32> -> vector<32x128xf32>
    %c0_11 = arith.constant 0 : index
    %c0_12 = arith.constant 0 : index
    %14 = vector.load %arg7[%c0_11, %c0_12] : memref<1x128xf32, #tpu.memory_space<vmem>>, vector<1x128xf32>
    %15 = vector.broadcast %14 : vector<1x128xf32> to vector<32x128xf32>
    %16 = arith.addf %13, %15 : vector<32x128xf32>
    %cst_13 = arith.constant 0.000000e+00 : f32
    %17 = vector.broadcast %cst_13 : f32 to vector<32x128xf32>
    %18 = arith.maximumf %16, %17 : vector<32x128xf32>
    %c0_14 = arith.constant 0 : index
    %c0_15 = arith.constant 0 : index
    %19 = vector.load %arg8[%c0_14, %c0_15] : memref<128x256xf32, #tpu.memory_space<vmem>>, vector<128x256xf32>
    %cst_16 = arith.constant dense<0.000000e+00> : vector<32x256xf32>
    %20 = tpu.matmul %18, %19, %cst_16 {dimension_numbers = #tpu.dot_dimension_numbers<[1], [0], [0], [1], [0, 0, 1, 1], [], []>} : vector<32x128xf32>, vector<128x256xf32>, vector<32x256xf32> -> vector<32x256xf32>
    %c0_17 = arith.constant 0 : index
    %c0_18 = arith.constant 0 : index
    %21 = vector.load %arg9[%c0_17, %c0_18] : memref<1x256xf32, #tpu.memory_space<vmem>>, vector<1x256xf32>
    %22 = vector.broadcast %21 : vector<1x256xf32> to vector<32x256xf32>
    %23 = arith.addf %20, %22 : vector<32x256xf32>
    %24 = vector.shape_cast %23 : vector<32x256xf32> to vector<2x16x256xf32>
    %c0_19 = arith.constant 0 : index
    %c0_20 = arith.constant 0 : index
    %c0_21 = arith.constant 0 : index
    %25 = vector.load %arg3[%c0_19, %c0_20, %c0_21] : memref<2x16x4xf32, #tpu.memory_space<vmem>>, vector<2x16x4xf32>
    %26 = vector.shape_cast %25 : vector<2x16x4xf32> to vector<32x4xf32>
    %c0_22 = arith.constant 0 : index
    %c0_23 = arith.constant 0 : index
    %27 = vector.load %arg4[%c0_22, %c0_23] : memref<4x64xf32, #tpu.memory_space<vmem>>, vector<4x64xf32>
    %cst_24 = arith.constant dense<0.000000e+00> : vector<32x64xf32>
    %28 = tpu.matmul %26, %27, %cst_24 {dimension_numbers = #tpu.dot_dimension_numbers<[1], [0], [0], [1], [0, 0, 1, 1], [], []>} : vector<32x4xf32>, vector<4x64xf32>, vector<32x64xf32> -> vector<32x64xf32>
    %c0_25 = arith.constant 0 : index
    %c0_26 = arith.constant 0 : index
    %29 = vector.load %arg5[%c0_25, %c0_26] : memref<1x64xf32, #tpu.memory_space<vmem>>, vector<1x64xf32>
    %30 = vector.broadcast %29 : vector<1x64xf32> to vector<32x64xf32>
    %31 = arith.addf %28, %30 : vector<32x64xf32>
    %cst_27 = arith.constant 0.000000e+00 : f32
    %32 = vector.broadcast %cst_27 : f32 to vector<32x64xf32>
    %33 = arith.maximumf %31, %32 : vector<32x64xf32>
    %c0_28 = arith.constant 0 : index
    %c0_29 = arith.constant 0 : index
    %34 = vector.load %arg6[%c0_28, %c0_29] : memref<64x128xf32, #tpu.memory_space<vmem>>, vector<64x128xf32>
    %cst_30 = arith.constant dense<0.000000e+00> : vector<32x128xf32>
    %35 = tpu.matmul %33, %34, %cst_30 {dimension_numbers = #tpu.dot_dimension_numbers<[1], [0], [0], [1], [0, 0, 1, 1], [], []>} : vector<32x64xf32>, vector<64x128xf32>, vector<32x128xf32> -> vector<32x128xf32>
    %c0_31 = arith.constant 0 : index
    %c0_32 = arith.constant 0 : index
    %36 = vector.load %arg7[%c0_31, %c0_32] : memref<1x128xf32, #tpu.memory_space<vmem>>, vector<1x128xf32>
    %37 = vector.broadcast %36 : vector<1x128xf32> to vector<32x128xf32>
    %38 = arith.addf %35, %37 : vector<32x128xf32>
    %cst_33 = arith.constant 0.000000e+00 : f32
    %39 = vector.broadcast %cst_33 : f32 to vector<32x128xf32>
    %40 = arith.maximumf %38, %39 : vector<32x128xf32>
    %c0_34 = arith.constant 0 : index
    %c0_35 = arith.constant 0 : index
    %41 = vector.load %arg8[%c0_34, %c0_35] : memref<128x256xf32, #tpu.memory_space<vmem>>, vector<128x256xf32>
    %cst_36 = arith.constant dense<0.000000e+00> : vector<32x256xf32>
    %42 = tpu.matmul %40, %41, %cst_36 {dimension_numbers = #tpu.dot_dimension_numbers<[1], [0], [0], [1], [0, 0, 1, 1], [], []>} : vector<32x128xf32>, vector<128x256xf32>, vector<32x256xf32> -> vector<32x256xf32>
    %c0_37 = arith.constant 0 : index
    %c0_38 = arith.constant 0 : index
    %43 = vector.load %arg9[%c0_37, %c0_38] : memref<1x256xf32, #tpu.memory_space<vmem>>, vector<1x256xf32>
    %44 = vector.broadcast %43 : vector<1x256xf32> to vector<32x256xf32>
    %45 = arith.addf %42, %44 : vector<32x256xf32>
    %46 = vector.shape_cast %45 : vector<32x256xf32> to vector<2x16x256xf32>
    %c0_39 = arith.constant 0 : index
    %c0_40 = arith.constant 0 : index
    %47 = vector.load %arg12[%c0_39, %c0_40] : memref<2x256xf32, #tpu.memory_space<vmem>>, vector<2x256xf32>
    %cst_41 = arith.constant dense<0xFF800000> : vector<2x256xf32>
    %48 = vector.multi_reduction <maximumf>, %24, %cst_41 [1] : vector<2x16x256xf32> to vector<2x256xf32>
    %49 = arith.maximumf %47, %48 : vector<2x256xf32>
    %c0_42 = arith.constant 0 : index
    %c0_43 = arith.constant 0 : index
    %50 = vector.load %arg12[%c0_42, %c0_43] : memref<2x256xf32, #tpu.memory_space<vmem>>, vector<2x256xf32>
    tpu.vector_store %arg12[%c0_42, %c0_43], %49 {strides = array<i32>} : memref<2x256xf32, #tpu.memory_space<vmem>>, vector<2x256xf32>,
    %c0_44 = arith.constant 0 : index
    %c0_45 = arith.constant 0 : index
    %51 = vector.load %arg13[%c0_44, %c0_45] : memref<2x256xf32, #tpu.memory_space<vmem>>, vector<2x256xf32>
    %cst_46 = arith.constant dense<0xFF800000> : vector<2x256xf32>
    %52 = vector.multi_reduction <maximumf>, %46, %cst_46 [1] : vector<2x16x256xf32> to vector<2x256xf32>
    %53 = arith.maximumf %51, %52 : vector<2x256xf32>
    %c0_47 = arith.constant 0 : index
    %c0_48 = arith.constant 0 : index
    %54 = vector.load %arg13[%c0_47, %c0_48] : memref<2x256xf32, #tpu.memory_space<vmem>>, vector<2x256xf32>
    tpu.vector_store %arg13[%c0_47, %c0_48], %53 {strides = array<i32>} : memref<2x256xf32, #tpu.memory_space<vmem>>, vector<2x256xf32>,
    %c0_i32_49 = arith.constant 0 : i32
    %55 = arith.cmpi eq, %arg1, %c0_i32_49 : i32
    %56 = arith.extui %55 : i1 to i32
    %c0_i32_50 = arith.constant 0 : i32
    %57 = arith.cmpi ne, %56, %c0_i32_50 : i32
    scf.if %57 {
      %c0_51 = arith.constant 0 : index
      %c0_52 = arith.constant 0 : index
      %58 = vector.load %arg12[%c0_51, %c0_52] : memref<2x256xf32, #tpu.memory_space<vmem>>, vector<2x256xf32>
      %c0_53 = arith.constant 0 : index
      %c0_54 = arith.constant 0 : index
      %c0_55 = arith.constant 0 : index
      %59 = vector.load %arg10[%c0_53, %c0_54, %c0_55] : memref<1x2x256xf32, #tpu.memory_space<vmem>>, vector<1x2x256xf32>
      %60 = vector.shape_cast %59 : vector<1x2x256xf32> to vector<2x256xf32>
      %61 = vector.shape_cast %58 : vector<2x256xf32> to vector<1x2x256xf32>
      tpu.vector_store %arg10[%c0_53, %c0_54, %c0_55], %61 {strides = array<i32>} : memref<1x2x256xf32, #tpu.memory_space<vmem>>, vector<1x2x256xf32>,
      %c0_56 = arith.constant 0 : index
      %c0_57 = arith.constant 0 : index
      %62 = vector.load %arg13[%c0_56, %c0_57] : memref<2x256xf32, #tpu.memory_space<vmem>>, vector<2x256xf32>
      %c0_58 = arith.constant 0 : index
      %c0_59 = arith.constant 0 : index
      %c0_60 = arith.constant 0 : index
      %63 = vector.load %arg11[%c0_58, %c0_59, %c0_60] : memref<1x2x256xf32, #tpu.memory_space<vmem>>, vector<1x2x256xf32>
      %64 = vector.shape_cast %63 : vector<1x2x256xf32> to vector<2x256xf32>
      %65 = vector.shape_cast %62 : vector<2x256xf32> to vector<1x2x256xf32>
      tpu.vector_store %arg11[%c0_58, %c0_59, %c0_60], %65 {strides = array<i32>} : memref<1x2x256xf32, #tpu.memory_space<vmem>>, vector<1x2x256xf32>,
    } else {
    }
    return
  }
  func.func @transform_0(%arg0: i32, %arg1: i32) -> (i32, i32, i32) {
    %c0_i32 = arith.constant 0 : i32
    %c0_i32_0 = arith.constant 0 : i32
    return %arg0, %arg1, %c0_i32 : i32, i32, i32
  }
  func.func @transform_1(%arg0: i32, %arg1: i32) -> (i32, i32, i32) {
    %c0_i32 = arith.constant 0 : i32
    %c0_i32_0 = arith.constant 0 : i32
    return %arg0, %arg1, %c0_i32 : i32, i32, i32
  }
  func.func @transform_2(%arg0: i32, %arg1: i32) -> (i32, i32) {
    %c0_i32 = arith.constant 0 : i32
    %c0_i32_0 = arith.constant 0 : i32
    %c0_i32_1 = arith.constant 0 : i32
    return %c0_i32, %c0_i32_0 : i32, i32
  }
  func.func @transform_3(%arg0: i32, %arg1: i32) -> (i32, i32) {
    %c0_i32 = arith.constant 0 : i32
    %c0_i32_0 = arith.constant 0 : i32
    %c0_i32_1 = arith.constant 0 : i32
    return %c0_i32, %c0_i32_0 : i32, i32
  }
  func.func @transform_4(%arg0: i32, %arg1: i32) -> (i32, i32) {
    %c0_i32 = arith.constant 0 : i32
    %c0_i32_0 = arith.constant 0 : i32
    %c0_i32_1 = arith.constant 0 : i32
    return %c0_i32, %c0_i32_0 : i32, i32
  }
  func.func @transform_5(%arg0: i32, %arg1: i32) -> (i32, i32) {
    %c0_i32 = arith.constant 0 : i32
    %c0_i32_0 = arith.constant 0 : i32
    %c0_i32_1 = arith.constant 0 : i32
    return %c0_i32, %c0_i32_0 : i32, i32
  }
  func.func @transform_6(%arg0: i32, %arg1: i32) -> (i32, i32) {
    %c0_i32 = arith.constant 0 : i32
    %c0_i32_0 = arith.constant 0 : i32
    %c0_i32_1 = arith.constant 0 : i32
    return %c0_i32, %c0_i32_0 : i32, i32
  }
  func.func @transform_7(%arg0: i32, %arg1: i32) -> (i32, i32) {
    %c0_i32 = arith.constant 0 : i32
    %c0_i32_0 = arith.constant 0 : i32
    %c0_i32_1 = arith.constant 0 : i32
    return %c0_i32, %c0_i32_0 : i32, i32
  }
  func.func @transform_8(%arg0: i32, %arg1: i32) -> (i32, i32, i32) {
    %c0_i32 = arith.constant 0 : i32
    %c0_i32_0 = arith.constant 0 : i32
    %c0_i32_1 = arith.constant 0 : i32
    return %arg0, %c0_i32, %c0_i32_0 : i32, i32, i32
  }
  func.func @transform_9(%arg0: i32, %arg1: i32) -> (i32, i32, i32) {
    %c0_i32 = arith.constant 0 : i32
    %c0_i32_0 = arith.constant 0 : i32
    %c0_i32_1 = arith.constant 0 : i32
    return %arg0, %c0_i32, %c0_i32_0 : i32, i32, i32
  }
}

</mosaic_0001>

<bundles_post_ra>
// kernel: state_embed_h_forward.1
= control target key start
LH: loop header
LB: loop body
LE: loop exit
PB: predicated region body
PF: predicated region fallthrough
CT: control target
= control target key end

     0   :  { %15 = vsyncpa [#allocation5], 0  ;;  %s601_s12 = smov [#allocation4]   ;;  %s602_s14 = smov 256   ;;  %s872_s0 = inlined_call_operand.vmem [shape: f32[2,16,4], index: 0, kind: input, shape index: {}]   ;;  %s873_s1 = inlined_call_operand.vmem [shape: f32[2,16,4], index: 1, kind: input, shape index: {}]   ;;  %s874_s2 = inlined_call_operand.vmem [shape: f32[4,64], index: 2, kind: input, shape index: {}]   ;;  %s875_s3 = inlined_call_operand.vmem [shape: f32[1,64], index: 3, kind: input, shape index: {}]   ;;  %s876_s4 = inlined_call_operand.vmem [shape: f32[64,128], index: 4, kind: input, shape index: {}]   ;;  %s877_s5 = inlined_call_operand.vmem [shape: f32[1,128], index: 5, kind: input, shape index: {}]   ;;  %s878_s6 = inlined_call_operand.hbm [shape: f32[128,256], index: 6, kind: input, shape index: {}]   ;;  %s879_s7 = inlined_call_operand.vmem [shape: f32[1,256], index: 7, kind: input, shape index: {}]   ;;  %s880_s8 = inlined_call_operand.vmem [shape: f32[1,2,256], index: 8, kind: output, shape index: {0}]   ;;  %s881_s9 = inlined_call_operand.vmem [shape: f32[1,2,256], index: 9, kind: output, shape index: {1}]  }
   0x1   :  { %s32_s11 = sshll.u32 %s878_s6, 4  ;;  %s34_s13 = sshll.u32 %s601_s12, 4  ;;  %s33_s11 = int_to_ptr.hbm [resolvable:$true] %s32_s11  ;;  %s35_s13 = int_to_ptr.vmem [resolvable:$true] %s34_s13 }
   0x2   :  { %s603_s15 = smov 16  }
   0x3   :  { %40 = dma.hbm_to_vmem [thread:$0]  %s33_s11, 4096, %s35_s13, [#allocation5], %s602_s14, %s602_s14, %s603_s15  }
   0x4   :  { %599 = dma.done.wait [#allocation5], 4096  }
   0x5   :  { %600 = vsyncadd [#allocation5], 4294963200  ;;  %vm75_vm0 = vcmask 1043456   ;;  %vm62_vm1 = vcmask 31744   ;;  %v57_v0 = vld [vmem:[%s874_s2] sm:$0xf] }
   0x6   :  { %v53_v1 = vld [vmem:[%s872_s0] sm:$0xff]  ;;  %535 = vmatpush.msk.msra.mxu0 %vm75_vm0, %v57_v0  ;;  %v54_v2 = vld [vmem:[%s872_s0 + $0x8] sm:$0xff]  ;;  %v55_v3 = vld [vmem:[%s872_s0 + $0x10] sm:$0xff]  ;;  %vm124_vm2 = vcmask 523264   ;;  %vm453_vm3 = vcmask 1041408   ;;  %vm461_vm4 = vcmask 1041409  }
   0x7   :  { %536 = vmatmul.msk.f32.vlgmr.msra.gmra.mxu0 %vm62_vm1, %v53_v1  ;;  %v56_v4 = vld [vmem:[%s872_s0 + $0x18] sm:$0xff]  ;;  %v118_v6 = vld [vmem:[%s876_s4 + $0x30] sm:$0xff]  ;;  %v117_v7 = vld [vmem:[%s876_s4 + $0x28] sm:$0xff]  ;;  %vm463_vm5 = vcmask 1043459   ;;  %vm465_vm6 = vcmask 1045509   ;;  %vm467_vm7 = vcmask 1047559  }
   0x8   :  { %544 = vmatpush.msk.msrb.mxu0 %vm75_vm0, %v57_v0  ;;  %v119_v5 = vld [vmem:[%s876_s4 + $0x38] sm:$0xff]  ;;  %v116_v8 = vld [vmem:[%s876_s4 + $0x20] sm:$0xff]  ;;  %v267_v11 = vld [vmem:[%s873_s1 + $0x8] sm:$0xff] }
   0x9   :  { %145 = vmatpush.msra.mxu1 %v119_v5  ;;  %v266_v9 = vld [vmem:[%s873_s1] sm:$0xff]  ;;  %v115_v10 = vld [vmem:[%s876_s4 + $0x18] sm:$0xff]  ;;  %v268_v12 = vld [vmem:[%s873_s1 + $0x10] sm:$0xff] }
   0xa   :  { %v269_v13 = vld [vmem:[%s873_s1 + $0x18] sm:$0xff]  ;;  %v114_v14 = vld [vmem:[%s876_s4 + $0x10] sm:$0xff]  ;;  %v113_v15 = vld [vmem:[%s876_s4 + $0x8] sm:$0xff] }
   0xb   :  { %146 = vmatpush.msra.mxu1 %v118_v6  ;;  %v112_v16 = vld [vmem:[%s876_s4] sm:$0xff]  ;;  %v730_v30 = vld [vmem:[#allocation4 + $0xf0] sm:$0xff]  ;;  %v734_v32 = vld [vmem:[#allocation4 + $0xe0] sm:$0xff] }
   0xc   :  { %v720_v17 = vld [vmem:[%s875_s3] ss:$0 sm:$0xff]  ;;  %208 = vmatpush.msra.mxu2 %v730_v30  ;;  %v738_v33 = vld [vmem:[#allocation4 + $0xe8] sm:$0xff]  ;;  %v740_v34 = vld [vmem:[#allocation4 + $0xd0] sm:$0xff]  ;;  %360 = vmatpush.msra.mxu0 %v730_v30 }
   0xd   :  { %147 = vmatpush.msra.mxu1 %v117_v7  ;;  %v732_v31 = vld [vmem:[#allocation4 + $0xf8] sm:$0xff]  ;;  %v748_v38 = vld [vmem:[#allocation4 + $0xc0] sm:$0xff]  ;;  %v750_v39 = vld [vmem:[#allocation4 + $0xc8] sm:$0xff] }
   0xe   :  { %237 = vmatpush.msra.mxu3 %v732_v31  ;;  %v742_v35 = vld [vmem:[#allocation4 + $0xd8] sm:$0xff]  ;;  %209 = vmatpush.msra.mxu2 %v734_v32  ;;  %v755_v41 = vld [vmem:[#allocation4 + $0xb0] sm:$0xff]  ;;  %v763_v43 = vld [vmem:[#allocation4 + $0xa0] sm:$0xff] }
   0xf   :  { %537 = vmatmul.msk.f32.gmra.mxu0 %vm62_vm1, %v54_v2  ;;  %148 = vmatpush.msra.mxu1 %v116_v8  ;;  %v757_v42 = vld [vmem:[#allocation4 + $0xb8] sm:$0xff]  ;;  %v765_v44 = vld [vmem:[#allocation4 + $0xa8] sm:$0xff]  ;;  %v770_v45 = vld [vmem:[#allocation4 + $0x90] sm:$0xff] }
  0x10   :  { %238 = vmatpush.msra.mxu3 %v738_v33  ;;  %361 = vmatpush.msra.mxu0 %v734_v32  ;;  %v772_v46 = vld [vmem:[#allocation4 + $0x98] sm:$0xff]  ;;  %v778_v49 = vld [vmem:[#allocation4 + $0x80] sm:$0xff]  ;;  %v780_v50 = vld [vmem:[#allocation4 + $0x88] sm:$0xff] }
  0x11   :  { %149 = vmatpush.msra.mxu1 %v115_v10  ;;  %210 = vmatpush.msra.mxu2 %v740_v34  ;;  %v785_v52 = vld [vmem:[#allocation4 + $0x70] sm:$0xff]  ;;  %v787_v53 = vld [vmem:[#allocation4 + $0x78] sm:$0xff]  ;;  %v793_v54 = vld [vmem:[#allocation4 + $0x60] sm:$0xff] }
  0x12   :  { %239 = vmatpush.msra.mxu3 %v742_v35  ;;  %362 = vmatpush.msra.mxu0 %v740_v34  ;;  %v795_v55 = vld [vmem:[#allocation4 + $0x68] sm:$0xff]  ;;  %v180_v56 = vld [vmem:[#allocation4 + $0x50] sm:$0xff]  ;;  %v181_v57 = vld [vmem:[#allocation4 + $0x58] sm:$0xff] }
  0x13   :  { %150 = vmatpush.msra.mxu1 %v114_v14  ;;  %211 = vmatpush.msra.mxu2 %v748_v38  ;;  %v178_v60 = vld [vmem:[#allocation4 + $0x40] sm:$0xff]  ;;  %v179_v61 = vld [vmem:[#allocation4 + $0x48] sm:$0xff]  ;;  %v176_v63 = vld [vmem:[#allocation4 + $0x30] sm:$0xff] }
  0x14   :  { %240 = vmatpush.msra.mxu3 %v750_v39  ;;  %363 = vmatpush.msra.mxu0 %v748_v38  ;;  %v177_v0 = vld [vmem:[#allocation4 + $0x38] sm:$0xff] }
  0x15   :  { %151 = vmatpush.msra.mxu1 %v113_v15  ;;  %212 = vmatpush.msra.mxu2 %v755_v41 }
  0x16   :  { %241 = vmatpush.msra.mxu3 %v757_v42  ;;  %364 = vmatpush.msra.mxu0 %v755_v41 }
  0x17   :  { %538 = vmatmul.msk.f32.gmra.mxu0 %vm62_vm1, %v55_v3  ;;  %152 = vmatpush.msra.mxu1 %v112_v16 }
  0x18   :  { %213 = vmatpush.msra.mxu2 %v763_v43  ;;  %242 = vmatpush.msra.mxu3 %v765_v44 }
  0x19   :  { %335 = vmatpush.msrb.mxu1 %v119_v5  ;;  %365 = vmatpush.msra.mxu0 %v763_v43  ;;  %v175_v5 = vld [vmem:[#allocation4 + $0x28] sm:$0xff] }
  0x1a   :  { %214 = vmatpush.msra.mxu2 %v770_v45  ;;  %243 = vmatpush.msra.mxu3 %v772_v46 }
  0x1b   :  { %336 = vmatpush.msrb.mxu1 %v118_v6  ;;  %366 = vmatpush.msra.mxu0 %v770_v45  ;;  %v172_v6 = vld [vmem:[#allocation4 + $0x10] sm:$0xff] }
  0x1c   :  { %215 = vmatpush.msra.mxu2 %v778_v49  ;;  %244 = vmatpush.msra.mxu3 %v780_v50 }
  0x1d   :  { %337 = vmatpush.msrb.mxu1 %v117_v7  ;;  %367 = vmatpush.msra.mxu0 %v778_v49  ;;  %v173_v7 = vld [vmem:[#allocation4 + $0x18] sm:$0xff] }
  0x1e   :  { %216 = vmatpush.msra.mxu2 %v785_v52  ;;  %245 = vmatpush.msra.mxu3 %v787_v53 }
  0x1f   :  { %539 = vmatmul.msk.f32.gmra.mxu0 %vm62_vm1, %v56_v4  ;;  %338 = vmatpush.msrb.mxu1 %v116_v8  ;;  %v174_v4 = vld [vmem:[#allocation4 + $0x20] sm:$0xff] }
  0x20   :  { %368 = vmatpush.msra.mxu0 %v785_v52  ;;  %217 = vmatpush.msra.mxu2 %v793_v54  ;;  %v170_v8 = vld [vmem:[#allocation4] sm:$0xff] }
  0x21   :  { %339 = vmatpush.msrb.mxu1 %v115_v10  ;;  %246 = vmatpush.msra.mxu3 %v795_v55  ;;  %v574_v10 = vld [vmem:[%s877_s5] ss:$0 sm:$0xff] }
  0x22   :  { %369 = vmatpush.msra.mxu0 %v793_v54  ;;  %218 = vmatpush.msra.mxu2 %v180_v56 }
  0x23   :  { %340 = vmatpush.msrb.mxu1 %v114_v14  ;;  %247 = vmatpush.msra.mxu3 %v181_v57 }
  0x24   :  { %370 = vmatpush.msra.mxu0 %v180_v56  ;;  %219 = vmatpush.msra.mxu2 %v178_v60 }
  0x25   :  { %341 = vmatpush.msrb.mxu1 %v113_v15  ;;  %248 = vmatpush.msra.mxu3 %v179_v61 }
  0x26   :  { %371 = vmatpush.msra.mxu0 %v178_v60  ;;  %220 = vmatpush.msra.mxu2 %v176_v63 }
  0x27   :  { %545 = vmatmul.msk.f32.vlgmr.msrb.gmra.mxu0 %vm62_vm1, %v266_v9  ;;  %342 = vmatpush.msrb.mxu1 %v112_v16  ;;  %v171_v9 = vld [vmem:[#allocation4 + $0x8] sm:$0xff] }
  0x28   :  { %249 = vmatpush.msra.mxu3 %v177_v0  ;;  %372 = vmatpush.msra.mxu0 %v176_v63 }
  0x29   :  { %221 = vmatpush.msra.mxu2 %v174_v4 }
  0x2a   :  { %250 = vmatpush.msra.mxu3 %v175_v5  ;;  %373 = vmatpush.msra.mxu0 %v174_v4 }
  0x2b   :  { %222 = vmatpush.msra.mxu2 %v172_v6 }
  0x2c   :  { %251 = vmatpush.msra.mxu3 %v173_v7  ;;  %374 = vmatpush.msra.mxu0 %v172_v6 }
  0x2d   :  { %223 = vmatpush.msra.mxu2 %v170_v8 }
  0x2e   :  { %252 = vmatpush.msra.mxu3 %v171_v9  ;;  %375 = vmatpush.msra.mxu0 %v170_v8 }
  0x2f   :  { %546 = vmatmul.msk.f32.gmra.mxu0 %vm62_vm1, %v267_v11  ;;  %553 = vmatpush.msrb.mxu2 %v730_v30 }
  0x30   :  { %389 = vmatpush.msrb.mxu3 %v732_v31 }
  0x31   :  { %554 = vmatpush.msrb.mxu2 %v734_v32 }
  0x32   :  { %390 = vmatpush.msrb.mxu3 %v738_v33 }
  0x33   :  { %555 = vmatpush.msrb.mxu2 %v740_v34 }
  0x34   :  { %391 = vmatpush.msrb.mxu3 %v742_v35 }
  0x35   :  { %556 = vmatpush.msrb.mxu2 %v748_v38 }
  0x36   :  { %392 = vmatpush.msrb.mxu3 %v750_v39 }
  0x37   :  { %547 = vmatmul.msk.f32.gmra.mxu0 %vm62_vm1, %v268_v12  ;;  %557 = vmatpush.msrb.mxu2 %v755_v41  ;;  %v604_v41 = vmov -inf  }
  0x38   :  { %393 = vmatpush.msrb.mxu3 %v757_v42  ;;  %51 = vst [vmem:[#allocation2] sm:$0xf] %v604_v41 }
  0x39   :  { %558 = vmatpush.msrb.mxu2 %v763_v43  ;;  %52 = vst [vmem:[#allocation3] sm:$0xf] %v604_v41 }
  0x3a   :  { %394 = vmatpush.msrb.mxu3 %v765_v44 }
  0x3b   :  { %559 = vmatpush.msrb.mxu2 %v770_v45 }
  0x3c   :  { %395 = vmatpush.msrb.mxu3 %v772_v46 }
  0x3d   :  { %560 = vmatpush.msrb.mxu2 %v778_v49 }
  0x3e   :  { %396 = vmatpush.msrb.mxu3 %v780_v50 }
  0x3f   :  { %548 = vmatmul.msk.f32.gmra.mxu0 %vm62_vm1, %v269_v13  ;;  %561 = vmatpush.msrb.mxu2 %v785_v52 }
  0x40   :  { %397 = vmatpush.msrb.mxu3 %v787_v53 }
  0x41   :  { %562 = vmatpush.msrb.mxu2 %v793_v54 }
  0x42   :  { %398 = vmatpush.msrb.mxu3 %v795_v55 }
  0x43   :  { %563 = vmatpush.msrb.mxu2 %v180_v56 }
  0x44   :  { %399 = vmatpush.msrb.mxu3 %v181_v57 }
  0x45   :  { %564 = vmatpush.msrb.mxu2 %v178_v60 }
  0x46   :  { %400 = vmatpush.msrb.mxu3 %v179_v61 }
  0x47   :  { %565 = vmatpush.msrb.mxu2 %v176_v63 }
  0x48   :  { %401 = vmatpush.msrb.mxu3 %v177_v0 }
  0x49   :  { %566 = vmatpush.msrb.mxu2 %v174_v4 }
  0x4a   :  { %402 = vmatpush.msrb.mxu3 %v175_v5 }
  0x4b   :  { %567 = vmatpush.msrb.mxu2 %v172_v6 }
  0x4c   :  { %403 = vmatpush.msrb.mxu3 %v173_v7 }
  0x4d   :  { %568 = vmatpush.msrb.mxu2 %v170_v8 }
  0x4e   :  { %404 = vmatpush.msrb.mxu3 %v171_v9 }
  0x84   :  { %v96_v18 = vpop.f32.mrf.mxu0 }
  0x85   :  { %v97_v19 = vadd.f32 %v720_v17, %v96_v18 }
  0x87   :  { %v108_v20 = vmax.f32 %v97_v19, 0.0 }
  0x89   :  { %540 = vmatmul.msk.f32.vlgmr.msra.gmra.mxu1 %vm124_vm2, %v108_v20 }
  0x8c   :  { %v99_v21 = vpop.f32.mrf.mxu0 }
  0x8d   :  { %v100_v22 = vadd.f32 %v720_v17, %v99_v21 }
  0x8f   :  { %v109_v23 = vmax.f32 %v100_v22, 0.0 }
  0x91   :  { %541 = vmatmul.msk.f32.gmra.mxu1 %vm124_vm2, %v109_v23 }
  0x94   :  { %v102_v24 = vpop.f32.mrf.mxu0 }
  0x95   :  { %v103_v25 = vadd.f32 %v720_v17, %v102_v24 }
  0x97   :  { %v110_v26 = vmax.f32 %v103_v25, 0.0 }
  0x99   :  { %542 = vmatmul.msk.f32.gmra.mxu1 %vm124_vm2, %v110_v26 }
  0x9c   :  { %v105_v27 = vpop.f32.mrf.mxu0 }
  0x9d   :  { %v106_v28 = vadd.f32 %v720_v17, %v105_v27 }
  0x9f   :  { %v111_v29 = vmax.f32 %v106_v28, 0.0 }
  0xa1   :  { %543 = vmatmul.msk.f32.gmra.mxu1 %vm124_vm2, %v111_v29 }
  0xa4   :  { %v299_v36 = vpop.f32.mrf.mxu0 }
  0xa5   :  { %v300_v37 = vadd.f32 %v720_v17, %v299_v36 }
  0xa7   :  { %v311_v40 = vmax.f32 %v300_v37, 0.0  ;;  %v202_v37 = vld [vmem:[%s879_s7] sm:$0x3] }
  0xa8   :  { %v834_v38 = vperm.slane %v202_v37, 1  ;;  %v838_v45 = vperm.slane %v202_v37, 0 }
  0xa9   :  { %549 = vmatmul.msk.f32.vlgmr.msrb.gmra.mxu1 %vm124_vm2, %v311_v40 }
  0xac   :  { %v302_v47 = vpop.f32.mrf.mxu0 }
  0xad   :  { %v303_v48 = vadd.f32 %v720_v17, %v302_v47 }
  0xaf   :  { %v312_v51 = vmax.f32 %v303_v48, 0.0 }
  0xb1   :  { %550 = vmatmul.msk.f32.gmra.mxu1 %vm124_vm2, %v312_v51 }
  0xb4   :  { %v305_v58 = vpop.f32.mrf.mxu0 }
  0xb5   :  { %v306_v59 = vadd.f32 %v720_v17, %v305_v58 }
  0xb7   :  { %v313_v62 = vmax.f32 %v306_v59, 0.0 }
  0xb9   :  { %551 = vmatmul.msk.f32.gmra.mxu1 %vm124_vm2, %v313_v62 }
  0xbc   :  { %v308_v1 = vpop.f32.mrf.mxu0 }
  0xbd   :  { %v309_v2 = vadd.f32 %v720_v17, %v308_v1 }
  0xbf   :  { %v314_v3 = vmax.f32 %v309_v2, 0.0 }
  0xc1   :  { %552 = vmatmul.msk.f32.gmra.mxu1 %vm124_vm2, %v314_v3 }
 0x106   :  { %v154_v11 = vpop.f32.mrf.mxu1 }
 0x107   :  { %v155_v12 = vadd.f32 %v574_v10, %v154_v11 }
 0x109   :  { %v166_v13 = vmax.f32 %v155_v12, 0.0 }
 0x10b   :  { %224 = vmatmul.f32.vlgmr.msra.gmra.mxu2 %v166_v13  ;;  %253 = vmatmul.f32.vlgmr.msra.gmra.mxu3 %v166_v13 }
 0x10e   :  { %v157_v14 = vpop.f32.mrf.mxu1 }
 0x10f   :  { %v158_v15 = vadd.f32 %v574_v10, %v157_v14 }
 0x111   :  { %v167_v16 = vmax.f32 %v158_v15, 0.0 }
 0x113   :  { %227 = vmatmul.f32.gmra.mxu2 %v167_v16  ;;  %256 = vmatmul.f32.gmra.mxu3 %v167_v16 }
 0x116   :  { %v160_v17 = vpop.f32.mrf.mxu1 }
 0x117   :  { %v161_v18 = vadd.f32 %v574_v10, %v160_v17 }
 0x119   :  { %v168_v19 = vmax.f32 %v161_v18, 0.0 }
 0x11b   :  { %230 = vmatmul.f32.gmra.mxu2 %v168_v19  ;;  %259 = vmatmul.f32.gmra.mxu3 %v168_v19 }
 0x11e   :  { %v163_v20 = vpop.f32.mrf.mxu1 }
 0x11f   :  { %v164_v21 = vadd.f32 %v574_v10, %v163_v20 }
 0x121   :  { %v169_v22 = vmax.f32 %v164_v21, 0.0 }
 0x123   :  { %233 = vmatmul.f32.gmra.mxu2 %v169_v22  ;;  %262 = vmatmul.f32.gmra.mxu3 %v169_v22 }
 0x126   :  { %v344_v23 = vpop.f32.mrf.mxu1 }
 0x127   :  { %v345_v24 = vadd.f32 %v574_v10, %v344_v23 }
 0x129   :  { %v356_v25 = vmax.f32 %v345_v24, 0.0 }
 0x12b   :  { %376 = vmatmul.f32.vlgmr.msra.gmra.mxu0 %v356_v25  ;;  %405 = vmatmul.f32.vlgmr.msrb.gmra.mxu3 %v356_v25 }
 0x12e   :  { %v347_v26 = vpop.f32.mrf.mxu1 }
 0x12f   :  { %v348_v27 = vadd.f32 %v574_v10, %v347_v26 }
 0x131   :  { %v357_v28 = vmax.f32 %v348_v27, 0.0 }
 0x133   :  { %379 = vmatmul.f32.vlgmr.msrb.gmra.mxu2 %v357_v28  ;;  %408 = vmatmul.f32.gmra.mxu3 %v357_v28 }
 0x136   :  { %v350_v29 = vpop.f32.mrf.mxu1 }
 0x137   :  { %v351_v30 = vadd.f32 %v574_v10, %v350_v29 }
 0x139   :  { %v358_v31 = vmax.f32 %v351_v30, 0.0 }
 0x13b   :  { %382 = vmatmul.f32.gmra.mxu2 %v358_v31  ;;  %411 = vmatmul.f32.gmra.mxu3 %v358_v31 }
 0x13e   :  { %v353_v32 = vpop.f32.mrf.mxu1 }
 0x13f   :  { %v354_v33 = vadd.f32 %v574_v10, %v353_v32  ;;  %v418_v32 = vld [vmem:[#allocation2] sm:$0xf] }
 0x141   :  { %v359_v34 = vmax.f32 %v354_v33, 0.0 }
 0x143   :  { %385 = vmatmul.f32.gmra.mxu2 %v359_v34  ;;  %414 = vmatmul.f32.gmra.mxu3 %v359_v34 }
 0x18e   :  { %v225_v35 = vpop.f32.mrf.mxu2  ;;  %v254_v36 = vpop.f32.mrf.mxu3 }
 0x18f   :  { %v255_v43 = vadd.f32 %v254_v36, %v834_v38  ;;  %v226_v50 = vadd.f32 %v225_v35, %v838_v45 }
 0x196   :  { %v228_v39 = vpop.f32.mrf.mxu2  ;;  %v257_v40 = vpop.f32.mrf.mxu3 }
 0x197   :  { %v258_v42 = vadd.f32 %v257_v40, %v834_v38  ;;  %v229_v46 = vadd.f32 %v228_v39, %v838_v45 }
 0x199   :  { %v426_v44 = vmax.f32 %v255_v43, %v258_v42  ;;  %v419_v51 = vmax.f32 %v226_v50, %v229_v46 }
 0x19b   :  { %v427_v47 = vrot.slane %v426_v44, 4  ;;  %v420_v53 = vrot.slane %v419_v51, 4 }
 0x19d   :  { %v428_v52 = vmax.f32 %v426_v44, %v427_v47  ;;  %v421_v61 = vmax.f32 %v419_v51, %v420_v53 }
 0x19e   :  { %v231_v48 = vpop.f32.mrf.mxu2  ;;  %v260_v49 = vpop.f32.mrf.mxu3 }
 0x19f   :  { %v429_v54 = vrot.slane %v428_v52, 2  ;;  %v232_v57 = vadd.f32 %v231_v48, %v838_v45  ;;  %v261_v58 = vadd.f32 %v260_v49, %v834_v38  ;;  %v422_v3 = vrot.slane %v421_v61, 2 }
 0x1a1   :  { %v430_v0 = vmax.f32 %v428_v52, %v429_v54  ;;  %v423_v10 = vmax.f32 %v421_v61, %v422_v3 }
 0x1a3   :  { %v431_v7 = vrot.slane %v430_v0, 1  ;;  %v424_v16 = vrot.slane %v423_v10, 1 }
 0x1a5   :  { %v432_v13 = vmax.f32 %v430_v0, %v431_v7  ;;  %v425_v25 = vmax.f32 %v423_v10, %v424_v16 }
 0x1a6   :  { %v234_v55 = vpop.f32.mrf.mxu2  ;;  %v263_v56 = vpop.f32.mrf.mxu3 }
 0x1a7   :  { %v235_v59 = vadd.f32 %v234_v55, %v838_v45  ;;  %v264_v60 = vadd.f32 %v263_v56, %v834_v38  ;;  %v451_v20 = vrot.slane %v432_v13, 6 }
 0x1a8   :  { %v377_v31 = vpop.f32.mrf.mxu0 }
 0x1a9   :  { %v433_v62 = vmax.f32 %v232_v57, %v235_v59  ;;  %v440_v63 = vmax.f32 %v261_v58, %v264_v60  ;;  %v454_v29 = vsel %vm453_vm3, %v425_v25, %v451_v20  ;;  %v378_v41 = vadd.f32 %v377_v31, %v838_v45 }
 0x1ab   :  { %v434_v1 = vrot.slane %v433_v62, 4  ;;  %v441_v2 = vrot.slane %v440_v63, 4 }
 0x1ad   :  { %v435_v4 = vmax.f32 %v433_v62, %v434_v1  ;;  %v442_v5 = vmax.f32 %v440_v63, %v441_v2 }
 0x1ae   :  { %v406_v6 = vpop.f32.mrf.mxu3 }
 0x1af   :  { %v436_v8 = vrot.slane %v435_v4, 2  ;;  %v443_v9 = vrot.slane %v442_v5, 2  ;;  %v407_v24 = vadd.f32 %v406_v6, %v834_v38 }
 0x1b1   :  { %v437_v11 = vmax.f32 %v435_v4, %v436_v8  ;;  %v444_v12 = vmax.f32 %v442_v5, %v443_v9 }
 0x1b3   :  { %v438_v14 = vrot.slane %v437_v11, 1  ;;  %v445_v15 = vrot.slane %v444_v12, 1 }
 0x1b5   :  { %v446_v17 = vmax.f32 %v444_v12, %v445_v15  ;;  %v439_v21 = vmax.f32 %v437_v11, %v438_v14 }
 0x1b6   :  { %v380_v18 = vpop.f32.mrf.mxu2  ;;  %v409_v19 = vpop.f32.mrf.mxu3 }
 0x1b7   :  { %v452_v22 = vrot.slane %v446_v17, 6  ;;  %v410_v23 = vadd.f32 %v409_v19, %v834_v38  ;;  %v381_v34 = vadd.f32 %v380_v18, %v838_v45  ;;  %v472_v17 = vld [vmem:[#allocation3] sm:$0xf] }
 0x1b9   :  { %v455_v26 = vsel %vm453_vm3, %v439_v21, %v452_v22  ;;  %v480_v28 = vmax.f32 %v407_v24, %v410_v23  ;;  %v473_v43 = vmax.f32 %v378_v41, %v381_v34 }
 0x1ba   :  { %v460_v27 = vrot.slane %v455_v26, 7 }
 0x1bb   :  { %v481_v36 = vrot.slane %v480_v28, 4  ;;  %v474_v46 = vrot.slane %v473_v43, 4 }
 0x1bc   :  { %v462_v30 = vsel %vm461_vm4, %v460_v27, %v454_v29 }
 0x1bd   :  { %v464_v33 = vsel %vm463_vm5, %v460_v27, %v462_v30  ;;  %v482_v44 = vmax.f32 %v480_v28, %v481_v36  ;;  %v475_v55 = vmax.f32 %v473_v43, %v474_v46 }
 0x1be   :  { %v466_v35 = vsel %vm465_vm6, %v460_v27, %v464_v33  ;;  %v383_v37 = vpop.f32.mrf.mxu2  ;;  %v412_v39 = vpop.f32.mrf.mxu3 }
 0x1bf   :  { %v468_v40 = vsel %vm467_vm7, %v460_v27, %v466_v35  ;;  %v483_v47 = vrot.slane %v482_v44, 2  ;;  %v384_v50 = vadd.f32 %v383_v37, %v838_v45  ;;  %v413_v51 = vadd.f32 %v412_v39, %v834_v38 }
 0x1c0   :  { %v470_v42 = vmax.f32 %v418_v32, %v468_v40  ;;  %v476_v61 = vrot.slane %v475_v55, 2 }
 0x1c1   :  { %v484_v58 = vmax.f32 %v482_v44, %v483_v47 }
 0x1c2   :  { %471 = vst [vmem:[#allocation2] sm:$0xf] %v470_v42 }
 0x1c3   :  { %v485_v0 = vrot.slane %v484_v58, 1 }
 0x1c5   :  { %v486_v4 = vmax.f32 %v484_v58, %v485_v0 }
 0x1c6   :  { %v386_v48 = vpop.f32.mrf.mxu2  ;;  %v415_v49 = vpop.f32.mrf.mxu3 }
 0x1c7   :  { %v387_v52 = vadd.f32 %v386_v48, %v838_v45  ;;  %v416_v53 = vadd.f32 %v415_v49, %v834_v38  ;;  %v477_v45 = vmax.f32 %v475_v55, %v476_v61  ;;  %v505_v9 = vrot.slane %v486_v4, 6 }
 0x1c9   :  { %v522_v54 = vld [vmem:[#allocation2] sm:$0xf]  ;;  %v487_v56 = vmax.f32 %v384_v50, %v387_v52  ;;  %v494_v57 = vmax.f32 %v413_v51, %v416_v53  ;;  %v478_v7 = vrot.slane %v477_v45, 1 }
 0x1ca   :  { %523 = vst [vmem:[%s880_s8] sm:$0xf] %v522_v54 }
 0x1cb   :  { %v488_v59 = vrot.slane %v487_v56, 4  ;;  %v495_v60 = vrot.slane %v494_v57, 4  ;;  %v479_v12 = vmax.f32 %v477_v45, %v478_v7 }
 0x1cd   :  { %v489_v62 = vmax.f32 %v487_v56, %v488_v59  ;;  %v496_v63 = vmax.f32 %v494_v57, %v495_v60  ;;  %v507_v15 = vsel %vm453_vm3, %v479_v12, %v505_v9 }
 0x1cf   :  { %v490_v1 = vrot.slane %v489_v62, 2  ;;  %v497_v2 = vrot.slane %v496_v63, 2 }
 0x1d1   :  { %v491_v3 = vmax.f32 %v489_v62, %v490_v1  ;;  %v498_v38 = vmax.f32 %v496_v63, %v497_v2 }
 0x1d3   :  { %v492_v5 = vrot.slane %v491_v3, 1  ;;  %v499_v6 = vrot.slane %v498_v38, 1 }
 0x1d5   :  { %v500_v8 = vmax.f32 %v498_v38, %v499_v6  ;;  %v493_v10 = vmax.f32 %v491_v3, %v492_v5 }
 0x1d7   :  { %v506_v11 = vrot.slane %v500_v8, 6 }
 0x1d9   :  { %v508_v13 = vsel %vm453_vm3, %v493_v10, %v506_v11 }
 0x1da   :  { %v511_v14 = vrot.slane %v508_v13, 7 }
 0x1dc   :  { %v512_v16 = vsel %vm461_vm4, %v511_v14, %v507_v15 }
 0x1dd   :  { %v513_v18 = vsel %vm463_vm5, %v511_v14, %v512_v16 }
 0x1de   :  { %v514_v19 = vsel %vm465_vm6, %v511_v14, %v513_v18 }
 0x1df   :  { %v515_v20 = vsel %vm467_vm7, %v511_v14, %v514_v19 }
 0x1e0   :  { %v517_v21 = vmax.f32 %v472_v17, %v515_v20 }
 0x1e2   :  { %518 = vst [vmem:[#allocation3] sm:$0xf] %v517_v21 }
 0x1e9   :  { %v524_v22 = vld [vmem:[#allocation3] sm:$0xf] }
 0x1ea   :  { %525 = vst [vmem:[%s881_s9] sm:$0xf] %v524_v22 }
 0x1eb   :  { %534 = vsyncpa [#allocation5], 1 }

</bundles_post_ra>
